<compile_context>
chip_gen: v7x
topology: tpu7x:2x2x1
jax: 0.10.0
libtpu: 0.0.40
codegen_flags: <defaults>
</compile_context>

<pallas_src>
import jax
import jax.numpy as jnp
from jax.experimental import pallas as pl
from jax.experimental.pallas import tpu as pltpu


def _evolve_gcn_kernel(w_all_ref, b_all_ref, uh_ref, wc_ref, bias_ref,
                       a_ref, x_ref,
                       out_ref, w_new_out_ref,
                       w_new_sc, acc_sc):
    """Fused EvolveGCN-O forward over one (row-tile i, k-tile k) grid point.

    i axis ("parallel"): output row tiles of A_hat — megacore-shardable.
    k axis ("arbitrary"): contraction over A_hat columns / X rows.
    """
    k = pl.program_id(1)
    D = wc_ref.shape[0]

    # ---- weight GRU (tiny: a few [D,D] matmuls) at the start of each row
    # tile's k-loop.  Recomputing per row tile keeps the kernel megacore-safe
    # (v7x shards the i axis across TensorCores, each with private scratch)
    # and costs negligible FLOPs relative to the aggregation.
    @pl.when(k == 0)
    def _():
        Wc = wc_ref[...]                                           # [D, D] f32
        # Fused gate pre-activations: rows [0:D)=Z, [D:2D)=R, [2D:3D)=Hcap.
        pre = (jnp.dot(w_all_ref[...], Wc, preferred_element_type=jnp.float32)
               + b_all_ref[...])                                   # [3D, D]
        Z = jax.nn.sigmoid(pre[:D])                                # update gate
        R = jax.nn.sigmoid(pre[D:2 * D])                           # reset gate
        Hcap = jnp.tanh(pre[2 * D:] +
                        jnp.dot(uh_ref[...], R * Wc,
                                preferred_element_type=jnp.float32))
        W_new = (1.0 - Z) * Wc + Z * Hcap                          # evolved weight
        w_new_sc[...] = W_new
        w_new_out_ref[...] = W_new          # one disjoint [D,D] slot per row tile
        acc_sc[...] = jnp.zeros_like(acc_sc)

    # ---- on-the-fly projection of this k-block of X:  XW_k = X_k @ W_new^T.
    # dot_general contracts X dim 1 with W_new dim 1 directly (PyG Linear
    # weight is [out, in]) — no transposed copy of W_new is materialized.
    xw = jax.lax.dot_general(x_ref[...], w_new_sc[...],
                             (((1,), (1,)), ((), ())),
                             preferred_element_type=jnp.float32)   # [tk, D] f32

    # ---- aggregation:  acc += A_hat[i, k] @ XW_k  (bf16 operands, f32 acc).
    a = a_ref[...]
    if a.dtype != jnp.bfloat16:            # static: only if caller passed f32
        a = a.astype(jnp.bfloat16)
    acc_sc[...] += jnp.dot(a, xw.astype(jnp.bfloat16),
                           preferred_element_type=jnp.float32)

    # ---- finalize row tile: add conv bias AFTER aggregation (A_hat rows do
    # not sum to 1, so the bias must not be folded into XW).
    @pl.when(k == pl.num_programs(1) - 1)
    def _():
        out_ref[...] = acc_sc[...] + bias_ref[...]
        # TODO(synk): D=32 < 128 lanes -> masked partial stores; lane-packing
        # the output to a (tm//4, 4*D=128) slab would remove them, at the cost
        # of an in-kernel sublane->lane relayout.  Minor here since the store
        # happens once per row tile (amortized over the k loop).


def fuse_gate_params(gates):
    """One-time gate-parameter fusion (hoist OUT of the per-snapshot forward).

    In the O-variant x == hidden == W, so Wg@W + Ug@W == (Wg + Ug)@W for the
    Z/R gates; all x-side matmuls collapse into one [3D, D] @ [D, D] matmul.
    """
    w_all = jnp.concatenate([gates["Wz"] + gates["Uz"],
                             gates["Wr"] + gates["Ur"],
                             gates["Wh"]], axis=0)                 # [3D, D]
    b_all = jnp.concatenate([gates["Bz"], gates["Br"], gates["Bh"]],
                            axis=0)                                # [3D, D]
    return w_all, b_all, gates["Uh"]


def evolve_gcno_forward(a_hat, x, conv_weight, conv_bias, fused_gates, *,
                        row_tile=512, k_tile=1024):
    """EvolveGCN-O forward.  Returns (node_output [N, D], W_new [D, D]).

    a_hat should be bf16 (produced directly by the normalization glue); an
    f32 a_hat is accepted and cast in-kernel (no standalone cast pass).
    """
    w_all, b_all, uh = fused_gates
    N, D = x.shape
    assert conv_weight.shape == (D, D), "EvolveGCNO requires in == out channels"

    tm = N if N <= row_tile else row_tile
    tk = N if N <= k_tile else k_tile
    # TODO(synk): ragged N (N % tile != 0) needs a masked K-tail; not required
    # for the demo shapes.
    assert N % tm == 0 and N % tk == 0, "N must be divisible by the tile sizes"
    assert tm % 8 == 0 and (tk % 128 == 0 or tk == N)
    num_i, num_k = N // tm, N // tk

    a_bytes = jnp.dtype(a_hat.dtype).itemsize
    cost = pl.CostEstimate(
        # aggregation + per-row-tile projection + per-row-tile weight GRU
        flops=int(2 * N * N * D + num_i * 2 * N * D * D + num_i * 8 * D * D * D),
        transcendentals=int(num_i * 3 * D * D),
        bytes_accessed=int(N * N * a_bytes            # A_hat stream (dominant)
                           + num_i * N * D * 4        # X re-read per row tile
                           + N * D * 4                # output
                           + (4 * D * D + num_i * D * D + D) * 4),  # params
    )

    grid_spec = pltpu.PrefetchScalarGridSpec(
        num_scalar_prefetch=0,
        grid=(num_i, num_k),
        in_specs=[
            pl.BlockSpec((3 * D, D), lambda i, k: (0, 0)),   # fused gate weights
            pl.BlockSpec((3 * D, D), lambda i, k: (0, 0)),   # fused gate biases
            pl.BlockSpec((D, D), lambda i, k: (0, 0)),       # Uh
            pl.BlockSpec((D, D), lambda i, k: (0, 0)),       # current conv weight
            pl.BlockSpec((1, D), lambda i, k: (0, 0)),       # conv bias
            # TODO(synk): if a profile shows exposed DMA on the A_hat stream,
            # add pipeline_mode=pl.Buffered(3) here (VMEM headroom exists).
            pl.BlockSpec((tm, tk), lambda i, k: (i, k)),     # A_hat tile (bf16)
            pl.BlockSpec((tk, D), lambda i, k: (k, 0)),      # X k-block (f32)
        ],
        out_specs=(
            pl.BlockSpec((tm, D), lambda i, k: (i, 0)),          # node output rows
            pl.BlockSpec((None, D, D), lambda i, k: (i, 0, 0)),  # W_new per row tile
        ),
        scratch_shapes=[
            pltpu.VMEM((D, D), jnp.float32),    # evolved weight, per-core
            pltpu.VMEM((tm, D), jnp.float32),   # f32 accumulator
        ],
    )

    # VMEM per step with default tiles: 2*tm*tk*2 (A dbuf) + 2*tk*D*4 (X dbuf)
    # + 2*tm*D*4 (out dbuf) + scratch + params  ~= 3 MiB  << 48 MiB limit,
    # which itself leaves headroom under v7x's 64 MiB physical VMEM.
    out, w_new_all = pl.pallas_call(
        _evolve_gcn_kernel,
        out_shape=(jax.ShapeDtypeStruct((N, D), jnp.float32),
                   jax.ShapeDtypeStruct((num_i, D, D), jnp.float32)),
        grid_spec=grid_spec,
        compiler_params=pltpu.CompilerParams(
            dimension_semantics=("parallel", "arbitrary"),  # megacore row split
            vmem_limit_bytes=48 * 1024 * 1024),
        cost_estimate=cost,
    )(w_all, b_all, uh, conv_weight, conv_bias.reshape(1, D), a_hat, x)

    # Every row tile wrote the identical evolved weight; take slot 0.
    return out, w_new_all[0]
    # TODO(synk): on v7x an fp8(e4m3) A_hat would halve the dominant stream
    # again (MXU supports bf16+fp8 there); needs accuracy validation.


def _reference(a_hat_f32, x, wc, b_conv, g):
    """Pure-JAX f32 reference matching EvolveGCNO._forward."""
    Z = jax.nn.sigmoid(g["Wz"] @ wc + g["Uz"] @ wc + g["Bz"])
    R = jax.nn.sigmoid(g["Wr"] @ wc + g["Ur"] @ wc + g["Br"])
    Hcap = jnp.tanh(g["Wh"] @ wc + g["Uh"] @ (R * wc) + g["Bh"])
    Wn = (1.0 - Z) * wc + Z * Hcap
    out = a_hat_f32 @ (x @ Wn.T) + b_conv[None, :]
    return out, Wn


if __name__ == "__main__":
    N = 128          # number of nodes
    D = 32           # in_channels == out_channels
    num_edges = 512

    key = jax.random.PRNGKey(0)
    k_x, k_e, k_w, k_b = jax.random.split(key, 4)

    # deterministic synthetic graph inputs
    X = jax.random.normal(k_x, (N, D), dtype=jnp.float32)
    edge_index = jax.random.randint(k_e, (2, num_edges), 0, N)

    # normalized adjacency A_hat = Dg^-1/2 (A + I) Dg^-1/2   (plain-JAX glue).
    A = jnp.zeros((N, N), jnp.float32).at[edge_index[0], edge_index[1]].set(1.0)
    A = jnp.maximum(A, A.T) + jnp.eye(N, dtype=jnp.float32)
    d_inv_sqrt = 1.0 / jnp.sqrt(A.sum(axis=1))
    A_hat_f32 = A * d_inv_sqrt[:, None] * d_inv_sqrt[None, :]
    # Produce the kernel's dominant stream directly in bf16 (no extra cast pass).
    A_hat = A_hat_f32.astype(jnp.bfloat16)

    # parameter init matching the module's uniform(-1/sqrt(D), 1/sqrt(D));
    # biases made nonzero to exercise the bias path.
    std = 1.0 / (D ** 0.5)
    def uni(k, shape):
        return jax.random.uniform(k, shape, jnp.float32, -std, std)

    ks = jax.random.split(k_w, 10)
    conv_weight = uni(ks[0], (D, D))
    gates = dict(
        Wz=uni(ks[1], (D, D)), Uz=uni(ks[2], (D, D)), Bz=0.1 * uni(ks[3], (D, D)),
        Wr=uni(ks[4], (D, D)), Ur=uni(ks[5], (D, D)), Br=0.1 * uni(ks[6], (D, D)),
        Wh=uni(ks[7], (D, D)), Uh=uni(ks[8], (D, D)), Bh=0.1 * uni(ks[9], (D, D)),
    )
    conv_bias = 0.1 * uni(k_b, (D,))

    # one-time parameter fusion (would be hoisted out of a temporal loop)
    fused_gates = fuse_gate_params(gates)

    out, w_new = evolve_gcno_forward(A_hat, X, conv_weight, conv_bias, fused_gates)
    out = jax.block_until_ready(out)

    ref_out, ref_w = _reference(A_hat_f32, X, conv_weight, conv_bias, gates)
    assert out.shape == (N, D)
    # weight evolution is pure f32 -> tight tolerance
    assert jnp.allclose(w_new, ref_w, atol=1e-5, rtol=1e-5)
    # aggregation uses bf16 A_hat / XW with f32 accumulation -> relaxed tolerance
    assert jnp.allclose(out, ref_out, atol=2e-2, rtol=2e-2)

    print("KERNEL_OK")
</pallas_src>

<mosaic_0001>
module attributes {stable_mosaic.version = 11 : i64} {
  func.func @_evolve_gcn_kernel(%arg0: i32, %arg1: i32, %arg2: memref<96x32xf32, #tpu.memory_space<vmem>>, %arg3: memref<96x32xf32, #tpu.memory_space<vmem>>, %arg4: memref<32x32xf32, #tpu.memory_space<vmem>>, %arg5: memref<32x32xf32, #tpu.memory_space<vmem>>, %arg6: memref<1x32xf32, #tpu.memory_space<vmem>>, %arg7: memref<128x128xbf16, #tpu.memory_space<vmem>>, %arg8: memref<128x32xf32, #tpu.memory_space<vmem>>, %arg9: memref<128x32xf32, #tpu.memory_space<vmem>>, %arg10: memref<1x32x32xf32, #tpu.memory_space<vmem>>, %arg11: memref<32x32xf32, #tpu.memory_space<vmem>>, %arg12: memref<128x32xf32, #tpu.memory_space<vmem>>) attributes {dimension_semantics = [#tpu.dimension_semantics<parallel>, #tpu.dimension_semantics<arbitrary>], iteration_bounds = array<i64: 1, 1>, scalar_prefetch = 0 : i64, scratch_operands = 2 : i64, tpu.core_type = #tpu.core_type<tc>, window_params = [{pipeline_mode = #tpu.pipeline_mode<synchronous>, transform_indices = @transform_0, window_bounds = array<i64: 96, 32>}, {pipeline_mode = #tpu.pipeline_mode<synchronous>, transform_indices = @transform_1, window_bounds = array<i64: 96, 32>}, {pipeline_mode = #tpu.pipeline_mode<synchronous>, transform_indices = @transform_2, window_bounds = array<i64: 32, 32>}, {pipeline_mode = #tpu.pipeline_mode<synchronous>, transform_indices = @transform_3, window_bounds = array<i64: 32, 32>}, {pipeline_mode = #tpu.pipeline_mode<synchronous>, transform_indices = @transform_4, window_bounds = array<i64: 1, 32>}, {transform_indices = @transform_5, window_bounds = array<i64: 128, 128>}, {transform_indices = @transform_6, window_bounds = array<i64: 128, 32>}, {transform_indices = @transform_7, window_bounds = array<i64: 128, 32>}, {transform_indices = @transform_8, window_bounds = array<i64: 1, 32, 32>}]} {
    %c0_i32 = arith.constant 0 : i32
    %0 = arith.cmpi eq, %arg1, %c0_i32 : i32
    %1 = arith.extui %0 : i1 to i32
    %c0_i32_0 = arith.constant 0 : i32
    %2 = arith.cmpi ne, %1, %c0_i32_0 : i32
    scf.if %2 {
      %c0_13 = arith.constant 0 : index
      %c0_14 = arith.constant 0 : index
      %15 = vector.load %arg5[%c0_13, %c0_14] : memref<32x32xf32, #tpu.memory_space<vmem>>, vector<32x32xf32>
      %c0_15 = arith.constant 0 : index
      %c0_16 = arith.constant 0 : index
      %16 = vector.load %arg2[%c0_15, %c0_16] : memref<96x32xf32, #tpu.memory_space<vmem>>, vector<96x32xf32>
      %cst_17 = arith.constant dense<0.000000e+00> : vector<96x32xf32>
      %17 = tpu.matmul %16, %15, %cst_17 {dimension_numbers = #tpu.dot_dimension_numbers<[1], [0], [0], [1], [0, 0, 1, 1], [], []>} : vector<96x32xf32>, vector<32x32xf32>, vector<96x32xf32> -> vector<96x32xf32>
      %c0_18 = arith.constant 0 : index
      %c0_19 = arith.constant 0 : index
      %18 = vector.load %arg3[%c0_18, %c0_19] : memref<96x32xf32, #tpu.memory_space<vmem>>, vector<96x32xf32>
      %19 = arith.addf %17, %18 : vector<96x32xf32>
      %20 = vector.extract_strided_slice %19 {offsets = [0, 0], sizes = [32, 32], strides = [1, 1]} : vector<96x32xf32> to vector<32x32xf32>
      %21 = arith.negf %20 : vector<32x32xf32>
      %22 = math.exp %21 : vector<32x32xf32>
      %cst_20 = arith.constant 1.000000e+00 : f32
      %23 = vector.broadcast %cst_20 : f32 to vector<32x32xf32>
      %24 = arith.addf %23, %22 : vector<32x32xf32>
      %25 = arith.divf %23, %24 : vector<32x32xf32>
      %26 = vector.extract_strided_slice %19 {offsets = [32, 0], sizes = [32, 32], strides = [1, 1]} : vector<96x32xf32> to vector<32x32xf32>
      %27 = arith.negf %26 : vector<32x32xf32>
      %28 = math.exp %27 : vector<32x32xf32>
      %cst_21 = arith.constant 1.000000e+00 : f32
      %29 = vector.broadcast %cst_21 : f32 to vector<32x32xf32>
      %30 = arith.addf %29, %28 : vector<32x32xf32>
      %31 = arith.divf %29, %30 : vector<32x32xf32>
      %32 = vector.extract_strided_slice %19 {offsets = [64, 0], sizes = [32, 32], strides = [1, 1]} : vector<96x32xf32> to vector<32x32xf32>
      %c0_22 = arith.constant 0 : index
      %c0_23 = arith.constant 0 : index
      %33 = vector.load %arg4[%c0_22, %c0_23] : memref<32x32xf32, #tpu.memory_space<vmem>>, vector<32x32xf32>
      %34 = arith.mulf %31, %15 : vector<32x32xf32>
      %cst_24 = arith.constant dense<0.000000e+00> : vector<32x32xf32>
      %35 = tpu.matmul %33, %34, %cst_24 {dimension_numbers = #tpu.dot_dimension_numbers<[1], [0], [0], [1], [0, 0, 1, 1], [], []>} : vector<32x32xf32>, vector<32x32xf32>, vector<32x32xf32> -> vector<32x32xf32>
      %36 = arith.addf %32, %35 : vector<32x32xf32>
      %37 = math.tanh %36 : vector<32x32xf32>
      %cst_25 = arith.constant 1.000000e+00 : f32
      %38 = vector.broadcast %cst_25 : f32 to vector<32x32xf32>
      %39 = arith.subf %38, %25 : vector<32x32xf32>
      %40 = arith.mulf %39, %15 : vector<32x32xf32>
      %41 = arith.mulf %25, %37 : vector<32x32xf32>
      %42 = arith.addf %40, %41 : vector<32x32xf32>
      %c0_26 = arith.constant 0 : index
      %c0_27 = arith.constant 0 : index
      %43 = vector.load %arg11[%c0_26, %c0_27] : memref<32x32xf32, #tpu.memory_space<vmem>>, vector<32x32xf32>
      tpu.vector_store %arg11[%c0_26, %c0_27], %42 {strides = array<i32>} : memref<32x32xf32, #tpu.memory_space<vmem>>, vector<32x32xf32>,
      %c0_28 = arith.constant 0 : index
      %c0_29 = arith.constant 0 : index
      %c0_30 = arith.constant 0 : index
      %44 = vector.load %arg10[%c0_28, %c0_29, %c0_30] : memref<1x32x32xf32, #tpu.memory_space<vmem>>, vector<1x32x32xf32>
      %45 = vector.shape_cast %44 : vector<1x32x32xf32> to vector<32x32xf32>
      %46 = vector.shape_cast %42 : vector<32x32xf32> to vector<1x32x32xf32>
      tpu.vector_store %arg10[%c0_28, %c0_29, %c0_30], %46 {strides = array<i32>} : memref<1x32x32xf32, #tpu.memory_space<vmem>>, vector<1x32x32xf32>,
      %cst_31 = arith.constant 0.000000e+00 : f32
      %47 = vector.broadcast %cst_31 : f32 to vector<128x32xf32>
      %c0_32 = arith.constant 0 : index
      %c0_33 = arith.constant 0 : index
      %48 = vector.load %arg12[%c0_32, %c0_33] : memref<128x32xf32, #tpu.memory_space<vmem>>, vector<128x32xf32>
      tpu.vector_store %arg12[%c0_32, %c0_33], %47 {strides = array<i32>} : memref<128x32xf32, #tpu.memory_space<vmem>>, vector<128x32xf32>,
    } else {
    }
    %c0 = arith.constant 0 : index
    %c0_1 = arith.constant 0 : index
    %3 = vector.load %arg8[%c0, %c0_1] : memref<128x32xf32, #tpu.memory_space<vmem>>, vector<128x32xf32>
    %c0_2 = arith.constant 0 : index
    %c0_3 = arith.constant 0 : index
    %4 = vector.load %arg11[%c0_2, %c0_3] : memref<32x32xf32, #tpu.memory_space<vmem>>, vector<32x32xf32>
    %cst = arith.constant dense<0.000000e+00> : vector<128x32xf32>
    %5 = tpu.matmul %3, %4, %cst {dimension_numbers = #tpu.dot_dimension_numbers<[1], [1], [0], [0], [0, 0, 1, 0], [], []>} : vector<128x32xf32>, vector<32x32xf32>, vector<128x32xf32> -> vector<128x32xf32>
    %c0_4 = arith.constant 0 : index
    %c0_5 = arith.constant 0 : index
    %6 = vector.load %arg7[%c0_4, %c0_5] : memref<128x128xbf16, #tpu.memory_space<vmem>>, vector<128x128xbf16>
    %c0_6 = arith.constant 0 : index
    %c0_7 = arith.constant 0 : index
    %7 = vector.load %arg12[%c0_6, %c0_7] : memref<128x32xf32, #tpu.memory_space<vmem>>, vector<128x32xf32>
    %8 = arith.truncf %5 : vector<128x32xf32> to vector<128x32xbf16>
    %cst_8 = arith.constant dense<0.000000e+00> : vector<128x32xf32>
    %9 = tpu.matmul %6, %8, %cst_8 {dimension_numbers = #tpu.dot_dimension_numbers<[1], [0], [0], [1], [0, 0, 1, 1], [], []>} : vector<128x128xbf16>, vector<128x32xbf16>, vector<128x32xf32> -> vector<128x32xf32>
    %10 = arith.addf %7, %9 : vector<128x32xf32>
    %c0_9 = arith.constant 0 : index
    %c0_10 = arith.constant 0 : index
    %11 = vector.load %arg12[%c0_9, %c0_10] : memref<128x32xf32, #tpu.memory_space<vmem>>, vector<128x32xf32>
    tpu.vector_store %arg12[%c0_9, %c0_10], %10 {strides = array<i32>} : memref<128x32xf32, #tpu.memory_space<vmem>>, vector<128x32xf32>,
    %c0_i32_11 = arith.constant 0 : i32
    %12 = arith.cmpi eq, %arg1, %c0_i32_11 : i32
    %13 = arith.extui %12 : i1 to i32
    %c0_i32_12 = arith.constant 0 : i32
    %14 = arith.cmpi ne, %13, %c0_i32_12 : i32
    scf.if %14 {
      %c0_13 = arith.constant 0 : index
      %c0_14 = arith.constant 0 : index
      %15 = vector.load %arg12[%c0_13, %c0_14] : memref<128x32xf32, #tpu.memory_space<vmem>>, vector<128x32xf32>
      %c0_15 = arith.constant 0 : index
      %c0_16 = arith.constant 0 : index
      %16 = vector.load %arg6[%c0_15, %c0_16] : memref<1x32xf32, #tpu.memory_space<vmem>>, vector<1x32xf32>
      %17 = vector.broadcast %16 : vector<1x32xf32> to vector<128x32xf32>
      %18 = arith.addf %15, %17 : vector<128x32xf32>
      %c0_17 = arith.constant 0 : index
      %c0_18 = arith.constant 0 : index
      %19 = vector.load %arg9[%c0_17, %c0_18] : memref<128x32xf32, #tpu.memory_space<vmem>>, vector<128x32xf32>
      tpu.vector_store %arg9[%c0_17, %c0_18], %18 {strides = array<i32>} : memref<128x32xf32, #tpu.memory_space<vmem>>, vector<128x32xf32>,
    } else {
    }
    return
  }
  func.func @transform_0(%arg0: i32, %arg1: i32) -> (i32, i32) {
    %c0_i32 = arith.constant 0 : i32
    %c0_i32_0 = arith.constant 0 : i32
    %c0_i32_1 = arith.constant 0 : i32
    return %c0_i32, %c0_i32_0 : i32, i32
  }
  func.func @transform_1(%arg0: i32, %arg1: i32) -> (i32, i32) {
    %c0_i32 = arith.constant 0 : i32
    %c0_i32_0 = arith.constant 0 : i32
    %c0_i32_1 = arith.constant 0 : i32
    return %c0_i32, %c0_i32_0 : i32, i32
  }
  func.func @transform_2(%arg0: i32, %arg1: i32) -> (i32, i32) {
    %c0_i32 = arith.constant 0 : i32
    %c0_i32_0 = arith.constant 0 : i32
    %c0_i32_1 = arith.constant 0 : i32
    return %c0_i32, %c0_i32_0 : i32, i32
  }
  func.func @transform_3(%arg0: i32, %arg1: i32) -> (i32, i32) {
    %c0_i32 = arith.constant 0 : i32
    %c0_i32_0 = arith.constant 0 : i32
    %c0_i32_1 = arith.constant 0 : i32
    return %c0_i32, %c0_i32_0 : i32, i32
  }
  func.func @transform_4(%arg0: i32, %arg1: i32) -> (i32, i32) {
    %c0_i32 = arith.constant 0 : i32
    %c0_i32_0 = arith.constant 0 : i32
    %c0_i32_1 = arith.constant 0 : i32
    return %c0_i32, %c0_i32_0 : i32, i32
  }
  func.func @transform_5(%arg0: i32, %arg1: i32) -> (i32, i32) {
    %c0_i32 = arith.constant 0 : i32
    return %arg0, %arg1 : i32, i32
  }
  func.func @transform_6(%arg0: i32, %arg1: i32) -> (i32, i32) {
    %c0_i32 = arith.constant 0 : i32
    %c0_i32_0 = arith.constant 0 : i32
    return %arg1, %c0_i32 : i32, i32
  }
  func.func @transform_7(%arg0: i32, %arg1: i32) -> (i32, i32) {
    %c0_i32 = arith.constant 0 : i32
    %c0_i32_0 = arith.constant 0 : i32
    return %arg0, %c0_i32 : i32, i32
  }
  func.func @transform_8(%arg0: i32, %arg1: i32) -> (i32, i32, i32) {
    %c0_i32 = arith.constant 0 : i32
    %c0_i32_0 = arith.constant 0 : i32
    %c0_i32_1 = arith.constant 0 : i32
    return %arg0, %c0_i32, %c0_i32_0 : i32, i32, i32
  }
}

</mosaic_0001>

<bundles_post_ra>
// kernel: tpu_custom_call.1
= control target key start
LH: loop header
LB: loop body
LE: loop exit
PB: predicated region body
PF: predicated region fallthrough
CT: control target
= control target key end

     0   :  { %vm62_vm0 = vcmask 261120   ;;  %s1705_s0 = inlined_call_operand.vmem [shape: f32[96,32], index: 0, kind: input, shape index: {}]   ;;  %s1706_s1 = inlined_call_operand.vmem [shape: f32[96,32], index: 1, kind: input, shape index: {}]   ;;  %s1707_s2 = inlined_call_operand.vmem [shape: f32[32,32], index: 2, kind: input, shape index: {}]   ;;  %s1708_s3 = inlined_call_operand.vmem [shape: f32[32,32], index: 3, kind: input, shape index: {}]   ;;  %s1709_s4 = inlined_call_operand.vmem [shape: f32[1,32], index: 4, kind: input, shape index: {}]   ;;  %s1710_s5 = inlined_call_operand.vmem [shape: bf16[128,128], index: 5, kind: input, shape index: {}]   ;;  %s1711_s6 = inlined_call_operand.vmem [shape: f32[128,32], index: 6, kind: input, shape index: {}]   ;;  %s1712_s7 = inlined_call_operand.vmem [shape: f32[128,32], index: 7, kind: output, shape index: {0}]   ;;  %s1713_s8 = inlined_call_operand.hbm [shape: f32[1,32,32], index: 8, kind: output, shape index: {1}]  }
   0x1   :  { %v1343_v0 = vld [vmem:[%s1708_s3] sm:$0xff]  ;;  %v1348_v1 = vld [vmem:[%s1708_s3 + $0x8] sm:$0xff]  ;;  %v1353_v2 = vld [vmem:[%s1708_s3 + $0x10] sm:$0xff] }
   0x2   :  { %v1163_v3 = vpack.c.bf16 %v1348_v1, %v1343_v0  ;;  %v1360_v4 = vld [vmem:[%s1708_s3 + $0x18] sm:$0xff]  ;;  %v38_v5 = vld [vmem:[%s1705_s0] sm:$0xff]  ;;  %v39_v7 = vld [vmem:[%s1705_s0 + $0x8] sm:$0xff] }
   0x3   :  { %v1167_v6 = vpack.c.bf16 %v1360_v4, %v1353_v2  ;;  %1067 = vmatprep.mubr.msk.f32.mxu0 %vm62_vm0, %v38_v5  ;;  %v40_v8 = vld [vmem:[%s1705_s0 + $0x10] sm:$0xff] }
   0x4   :  { %1164 = vmatprep.subr.bf16.mxu0 %v1163_v3 }
   0x5   :  { %1166 = vmatpush3.bf16.msra.mxu0 %v1163_v3 }
   0x6   :  { %1168 = vmatprep.subr.bf16.mxu0 %v1167_v6 }
   0x9   :  { %1170 = vmatpush3.bf16.msra.mxu0 %v1167_v6 }
   0xa   :  { %14 = vsyncpa [#allocation5], 0  ;;  %v41_v9 = vld [vmem:[%s1705_s0 + $0x18] sm:$0xff]  ;;  %v42_v10 = vld [vmem:[%s1705_s0 + $0x20] sm:$0xff]  ;;  %s1292_s16 = smov [#allocation4]  }
   0xb   :  { %v43_v11 = vld [vmem:[%s1705_s0 + $0x28] sm:$0xff]  ;;  %v44_v12 = vld [vmem:[%s1705_s0 + $0x30] sm:$0xff]  ;;  %v45_v13 = vld [vmem:[%s1705_s0 + $0x38] sm:$0xff]  ;;  %s933_s17 = sshll.u32 %s1292_s16, 4  ;;  %s934_s17 = int_to_ptr.vmem [resolvable:$true] %s933_s17 }
   0xc   :  { %1068 = vmatmul.mubr.msk.f32.vlgmr.msra.gmra.mrb[0].mxu0 %vm62_vm0, %v39_v7  ;;  %v46_v14 = vld [vmem:[%s1705_s0 + $0x40] sm:$0xff]  ;;  %v47_v15 = vld [vmem:[%s1705_s0 + $0x48] sm:$0xff]  ;;  %v48_v16 = vld [vmem:[%s1705_s0 + $0x50] sm:$0xff]  ;;  %p1272_p1 = scmp.lt.s32.totalorder %s934_s17, %s934_s17 }
   0xd   :  { %1070 = vmatprep.mubr.msk.f32.mxu0 %vm62_vm0, %v40_v8  ;;  %v49_v17 = vld [vmem:[%s1705_s0 + $0x58] sm:$0xff]  ;;  %v272_v18 = vld [vmem:[%s1707_s2] sm:$0xff]  ;;  %v55_v23 = vld [vmem:[%s1706_s1 + $0x28] sm:$0xff]  ;;  %s1267_s0 = scalar_lea.vmem %s934_s17, 512 }
   0xe   :  { %v54_v24 = vld [vmem:[%s1706_s1 + $0x20] sm:$0xff]  ;;  %v57_v29 = vld [vmem:[%s1706_s1 + $0x38] sm:$0xff]  ;;  %v56_v31 = vld [vmem:[%s1706_s1 + $0x30] sm:$0xff]  ;;  %p1268_p0 = scmp.ne.s32.totalorder %s934_s17, %s1267_s0  ;;  %p1273_p2 = scmp.lt.s32.totalorder %s1267_s0, %s1267_s0 }
   0xf   :  { %v273_v57 = vld [vmem:[%s1707_s2 + $0x8] sm:$0xff]  ;;  %v274_v58 = vld [vmem:[%s1707_s2 + $0x10] sm:$0xff]  ;;  %v275_v59 = vld [vmem:[%s1707_s2 + $0x18] sm:$0xff] }
  0x10   :  { %1071 = vmatmul.mubr.msk.f32.gmra.mrb[2].mxu0 %vm62_vm0, %v41_v9  ;;  %v425_v60 = vld [vmem:[%s1711_s6] sm:$0xff]  ;;  %v51_v61 = vld [vmem:[%s1706_s1 + $0x8] sm:$0xff]  ;;  %v53_v5 = vld [vmem:[%s1706_s1 + $0x18] sm:$0xff]  ;;  %p1274_p3 = por %p1273_p2, %p1272_p1 }
  0x11   :  { %1073 = vmatprep.mubr.msk.f32.mxu0 %vm62_vm0, %v42_v10  ;;  %1107 = vmatprep.mubr.msk.f32.mxu1 %vm62_vm0, %v425_v60  ;;  %v50_v62 = vld [vmem:[%s1706_s1] sm:$0xff]  ;;  %v52_v6 = vld [vmem:[%s1706_s1 + $0x10] sm:$0xff]  ;;  %vm1180_vm1 = vmpackc.low %vm62_vm0, %vm62_vm0 }
  0x12   :  { %v427_v60 = vld [vmem:[%s1711_s6 + $0x10] sm:$0xff]  ;;  %p1275_p4 = pnand %p1274_p3, %p1268_p0 }
  0x14   :  { %1074 = vmatmul.mubr.msk.f32.gmra.mrb[4].mxu0 %vm62_vm0, %v43_v11 }
  0x15   :  { %1076 = vmatprep.mubr.msk.f32.mxu0 %vm62_vm0, %v44_v12 }
  0x18   :  { %1077 = vmatmul.mubr.msk.f32.gmra.mrb[6].mxu0 %vm62_vm0, %v45_v13 }
  0x19   :  { %1079 = vmatprep.mubr.msk.f32.mxu0 %vm62_vm0, %v46_v14 }
  0x1c   :  { %1080 = vmatmul.mubr.msk.f32.gmra.mrb[8].mxu0 %vm62_vm0, %v47_v15 }
  0x1d   :  { %1082 = vmatprep.mubr.msk.f32.mxu0 %vm62_vm0, %v48_v16 }
  0x20   :  { %1083 = vmatmul.mubr.msk.f32.gmra.mrb[10].mxu0 %vm62_vm0, %v49_v17 }
  0x21   :  { %1093 = vmatprep.mubr.msk.f32.mxu0 %vm62_vm0, %v272_v18 }
  0xdf   :  { %v1069_v19 = vpop.f32.mrb[0].mxu0 }
  0xe0   :  { %v165_v20 = vpop.f32.mrb[1].mxu0  ;;  %v171_v63 = vadd.f32 %v1069_v19, %v51_v61  ;;  %v428_v61 = vld [vmem:[%s1711_s6 + $0x18] sm:$0xff] }
  0xe1   :  { %v166_v3 = vadd.f32 %v165_v20, %v50_v62  ;;  %v429_v62 = vld [vmem:[%s1711_s6 + $0x20] sm:$0xff] }
  0xe2   :  { %v959_v7 = vmul.f32 -1.442695, %v171_v63  ;;  %v430_v63 = vld [vmem:[%s1711_s6 + $0x28] sm:$0xff] }
  0xe3   :  { %v1416_v21 = vpop.f32.mrb[2].mxu0  ;;  %v958_v9 = vmul.f32 -1.442695, %v166_v3  ;;  %v431_v3 = vld [vmem:[%s1711_s6 + $0x30] sm:$0xff] }
  0xe4   :  { %v1418_v22 = vpop.f32.mrb[3].mxu0  ;;  %v181_v8 = vadd.f32 %v1416_v21, %v53_v5  ;;  %v59_v21 = vld [vmem:[%s1706_s1 + $0x48] sm:$0xff]  ;;  %v432_v5 = vld [vmem:[%s1711_s6 + $0x38] sm:$0xff] }
  0xe5   :  { %v176_v10 = vadd.f32 %v1418_v22, %v52_v6  ;;  %v58_v22 = vld [vmem:[%s1706_s1 + $0x40] sm:$0xff] }
  0xe6   :  { %v961_v11 = vmul.f32 -1.442695, %v181_v8  ;;  %v433_v6 = vld [vmem:[%s1711_s6 + $0x40] sm:$0xff]  ;;  %v435_v8 = vld [vmem:[%s1711_s6 + $0x50] sm:$0xff] }
  0xe7   :  { %v1075_v25 = vpop.f32.mrb[4].mxu0  ;;  %v960_v12 = vmul.f32 -1.442695, %v176_v10  ;;  %v437_v10 = vld [vmem:[%s1711_s6 + $0x60] sm:$0xff] }
  0xe8   :  { %v191_v26 = vadd.f32 %v1075_v25, %v55_v23  ;;  %v185_v27 = vpop.f32.mrb[5].mxu0 }
  0xe9   :  { %v186_v28 = vadd.f32 %v185_v27, %v54_v24  ;;  %v61_v27 = vld [vmem:[%s1706_s1 + $0x58] sm:$0xff] }
  0xea   :  { %v963_v30 = vmul.f32 -1.442695, %v191_v26 }
  0xeb   :  { %v962_v32 = vmul.f32 -1.442695, %v186_v28  ;;  %v1078_v33 = vpop.f32.mrb[6].mxu0  ;;  %v60_v28 = vld [vmem:[%s1706_s1 + $0x50] sm:$0xff] }
  0xec   :  { %1227 = vpow2.f32 %v963_v30  ;;  %v201_v34 = vadd.f32 %v1078_v33, %v57_v29  ;;  %v195_v35 = vpop.f32.mrb[7].mxu0 }
  0xed   :  { %1229 = vpow2.f32 %v962_v32  ;;  %v196_v36 = vadd.f32 %v195_v35, %v56_v31 }
  0xee   :  { %v965_v37 = vmul.f32 -1.442695, %v201_v34 }
  0xef   :  { %v964_v38 = vmul.f32 -1.442695, %v196_v36 }
  0xf0   :  { %1231 = vpow2.f32 %v965_v37 }
  0xf1   :  { %1233 = vpow2.f32 %v964_v38 }
  0xf6   :  { %v1228_v39 = vpop.eup %1227 }
  0xf7   :  { %v1230_v40 = vpop.eup %1229  ;;  %v261_v41 = vadd.f32 1.0, %v1228_v39 }
  0xf8   :  { %v260_v42 = vadd.f32 1.0, %v1230_v40 }
  0xf9   :  { %1235 = vrcp.f32 %v261_v41 }
  0xfa   :  { %v1232_v43 = vpop.eup %1231  ;;  %1237 = vrcp.f32 %v260_v42 }
  0xfb   :  { %v263_v44 = vadd.f32 1.0, %v1232_v43  ;;  %v1234_v45 = vpop.eup %1233 }
  0xfc   :  { %v262_v46 = vadd.f32 1.0, %v1234_v45 }
  0xfd   :  { %1239 = vrcp.f32 %v263_v44 }
  0xfe   :  { %1241 = vrcp.f32 %v262_v46 }
  0xff   :  { %1243 = vpow2.f32 %v959_v7  ;;  %v434_v7 = vld [vmem:[%s1711_s6 + $0x48] sm:$0xff] }
 0x100   :  { %1245 = vpow2.f32 %v958_v9  ;;  %v436_v9 = vld [vmem:[%s1711_s6 + $0x58] sm:$0xff] }
 0x101   :  { %1247 = vpow2.f32 %v961_v11  ;;  %v438_v11 = vld [vmem:[%s1711_s6 + $0x68] sm:$0xff] }
 0x102   :  { %1249 = vpow2.f32 %v960_v12  ;;  %v439_v12 = vld [vmem:[%s1711_s6 + $0x70] sm:$0xff] }
 0x103   :  { %v1236_v47 = vpop.eup %1235 }
 0x104   :  { %v1238_v48 = vpop.eup %1237  ;;  %v277_v49 = vmul.f32 %v1236_v47, %v1348_v1 }
 0x105   :  { %v276_v50 = vmul.f32 %v1238_v48, %v1343_v0 }
 0x107   :  { %v1240_v51 = vpop.eup %1239  ;;  %v1171_v52 = vpack.c.bf16 %v277_v49, %v276_v50 }
 0x108   :  { %v279_v53 = vmul.f32 %v1240_v51, %v1360_v4  ;;  %v1242_v54 = vpop.eup %1241 }
 0x109   :  { %1172 = vmatprep.subr.bf16.mxu0 %v1171_v52  ;;  %v278_v55 = vmul.f32 %v1242_v54, %v1353_v2  ;;  %v1244_v13 = vpop.eup %1243 }
 0x10a   :  { %1174 = vmatpush3.bf16.msra.mxu0 %v1171_v52  ;;  %v1246_v14 = vpop.eup %1245  ;;  %v237_v15 = vadd.f32 1.0, %v1244_v13  ;;  %v440_v13 = vld [vmem:[%s1711_s6 + $0x78] sm:$0xff] }
 0x10b   :  { %v1175_v56 = vpack.c.bf16 %v279_v53, %v278_v55  ;;  %v1248_v16 = vpop.eup %1247  ;;  %v236_v17 = vadd.f32 1.0, %v1246_v14  ;;  %v1219_v14 = vld [vmem:[%s1710_s5 + $0x10] sm:$0xff]  }
 0x10c   :  { %v1250_v18 = vpop.eup %1249  ;;  %1251 = vrcp.f32 %v237_v15  ;;  %v239_v19 = vadd.f32 1.0, %v1248_v16  ;;  %v1223_v15 = vld [vmem:[%s1710_s5] sm:$0xff]   ;;  %v1291_v16 = vmov 0.0  }
 0x10d   :  { %1176 = vmatprep.subr.bf16.mxu0 %v1175_v56  ;;  %1253 = vrcp.f32 %v236_v17  ;;  %v238_v20 = vadd.f32 1.0, %v1250_v18  ;;  %415 = vst.msk [vmem:[#allocation3 + $0x30] sm:$0xff] %vm62_vm0, %v1291_v16  ;;  %409 = vst.msk [vmem:[#allocation3] sm:$0xff] %vm62_vm0, %v1291_v16 }
 0x10e   :  { %1178 = vmatpush3.bf16.msra.mxu0 %v1175_v56  ;;  %1255 = vrcp.f32 %v239_v19  ;;  %410 = vst.msk [vmem:[#allocation3 + $0x8] sm:$0xff] %vm62_vm0, %v1291_v16  ;;  %411 = vst.msk [vmem:[#allocation3 + $0x10] sm:$0xff] %vm62_vm0, %v1291_v16 }
 0x10f   :  { %1257 = vrcp.f32 %v238_v20  ;;  %412 = vst.msk [vmem:[#allocation3 + $0x18] sm:$0xff] %vm62_vm0, %v1291_v16  ;;  %413 = vst.msk [vmem:[#allocation3 + $0x20] sm:$0xff] %vm62_vm0, %v1291_v16 }
 0x110   :  { %414 = vst.msk [vmem:[#allocation3 + $0x28] sm:$0xff] %vm62_vm0, %v1291_v16  ;;  %416 = vst.msk [vmem:[#allocation3 + $0x38] sm:$0xff] %vm62_vm0, %v1291_v16 }
 0x111   :  { %1094 = vmatmul.mubr.msk.f32.vlgmr.msra.gmra.mrb[8].mxu0 %vm62_vm0, %v273_v57  ;;  %417 = vst.msk [vmem:[#allocation3 + $0x40] sm:$0xff] %vm62_vm0, %v1291_v16  ;;  %418 = vst.msk [vmem:[#allocation3 + $0x48] sm:$0xff] %vm62_vm0, %v1291_v16 }
 0x112   :  { %1096 = vmatprep.mubr.msk.f32.mxu0 %vm62_vm0, %v274_v58  ;;  %419 = vst.msk [vmem:[#allocation3 + $0x50] sm:$0xff] %vm62_vm0, %v1291_v16  ;;  %420 = vst.msk [vmem:[#allocation3 + $0x58] sm:$0xff] %vm62_vm0, %v1291_v16 }
 0x113   :  { %421 = vst.msk [vmem:[#allocation3 + $0x60] sm:$0xff] %vm62_vm0, %v1291_v16  ;;  %422 = vst.msk [vmem:[#allocation3 + $0x68] sm:$0xff] %vm62_vm0, %v1291_v16 }
 0x114   :  { %423 = vst.msk [vmem:[#allocation3 + $0x70] sm:$0xff] %vm62_vm0, %v1291_v16  ;;  %424 = vst.msk [vmem:[#allocation3 + $0x78] sm:$0xff] %vm62_vm0, %v1291_v16 }
 0x115   :  { %1097 = vmatmul.mubr.msk.f32.gmra.mrb[10].mxu0 %vm62_vm0, %v275_v59  ;;  %v426_v59 = vld [vmem:[%s1711_s6 + $0x8] sm:$0xff] }
 0x116   :  { %v1252_v33 = vpop.eup %1251  ;;  %1147 = vmatprep.mubr.bf16.mxu0 %v1223_v15 }
 0x117   :  { %v1254_v34 = vpop.eup %1253  ;;  %v386_v35 = vsub.f32 1.0, %v1252_v33 }
 0x118   :  { %v1256_v36 = vpop.eup %1255  ;;  %v385_v37 = vsub.f32 1.0, %v1254_v34 }
 0x119   :  { %v1258_v38 = vpop.eup %1257  ;;  %v388_v41 = vsub.f32 1.0, %v1256_v36  ;;  %v390_v42 = vmul.f32 %v386_v35, %v1348_v1 }
 0x11a   :  { %v387_v44 = vsub.f32 1.0, %v1258_v38  ;;  %v389_v45 = vmul.f32 %v385_v37, %v1343_v0 }
 0x11b   :  { %v392_v51 = vmul.f32 %v388_v41, %v1360_v4  ;;  %v1220_v41 = vld [vmem:[%s1710_s5 + $0x18] sm:$0xff]  }
 0x11c   :  { %v391_v1 = vmul.f32 %v387_v44, %v1353_v2  ;;  %v1222_v44 = vld [vmem:[%s1710_s5 + $0x28] sm:$0xff]  }
 0x1e4   :  { %v1095_v23 = vpop.f32.mrb[8].mxu0 }
 0x1e5   :  { %v1207_v24 = vadd.f32 %v1095_v23, %v59_v21  ;;  %v358_v25 = vpop.f32.mrb[9].mxu0 }
 0x1e6   :  { %v1208_v26 = vadd.f32 %v358_v25, %v58_v22 }
 0x1e7   :  { %1259 = vtanh.f32 %v1207_v24 }
 0x1e8   :  { %1261 = vtanh.f32 %v1208_v26  ;;  %v1098_v29 = vpop.f32.mrb[10].mxu0 }
 0x1e9   :  { %v1209_v30 = vadd.f32 %v1098_v29, %v61_v27  ;;  %v368_v31 = vpop.f32.mrb[11].mxu0 }
 0x1ea   :  { %v1210_v32 = vadd.f32 %v368_v31, %v60_v28 }
 0x1eb   :  { %1263 = vtanh.f32 %v1209_v30 }
 0x1ec   :  { %1265 = vtanh.f32 %v1210_v32 }
 0x1f1   :  { %v1260_v39 = vpop.eup %1259 }
 0x1f2   :  { %v1262_v40 = vpop.eup %1261  ;;  %v394_v43 = vmul.f32 %v1260_v39, %v1252_v33 }
 0x1f3   :  { %v393_v46 = vmul.f32 %v1262_v40, %v1254_v34 }
 0x1f4   :  { %v398_v47 = vadd.f32 %v394_v43, %v390_v42  ;;  %v1225_v42 = vld [vmem:[%s1710_s5 + $0x8] sm:$0xff]   ;;  %v1221_v43 = vld [vmem:[%s1710_s5 + $0x20] sm:$0xff]  }
 0x1f5   :  { %v1264_v48 = vpop.eup %1263  ;;  %v397_v49 = vadd.f32 %v393_v46, %v389_v45  ;;  %v1224_v45 = vld [vmem:[%s1710_s5 + $0x30] sm:$0xff]   ;;  %v1226_v46 = vld [vmem:[%s1710_s5 + $0x38] sm:$0xff]  }
 0x1f6   :  { %v1266_v50 = vpop.eup %1265  ;;  %402 = vst.msk [vmem:[#allocation2 + $0x8] sm:$0xff] %vm62_vm0, %v398_v47  ;;  %406 = vst.msk [vmem:[#allocation4 + $0x8] sm:$0xff] %vm62_vm0, %v398_v47  ;;  %v396_v52 = vmul.f32 %v1264_v48, %v1256_v36 }
 0x1f7   :  { %401 = vst.msk [vmem:[#allocation2] sm:$0xff] %vm62_vm0, %v397_v49  ;;  %405 = vst.msk [vmem:[#allocation4] sm:$0xff] %vm62_vm0, %v397_v49  ;;  %v395_v53 = vmul.f32 %v1266_v50, %v1258_v38 }
 0x1f8   :  { %v400_v0 = vadd.f32 %v396_v52, %v392_v51 }
 0x1f9   :  { %v399_v54 = vadd.f32 %v395_v53, %v391_v1 }
 0x1fa   :  { %404 = vst.msk [vmem:[#allocation2 + $0x18] sm:$0xff] %vm62_vm0, %v400_v0  ;;  %408 = vst.msk [vmem:[#allocation4 + $0x18] sm:$0xff] %vm62_vm0, %v400_v0 }
 0x1fb   :  { %403 = vst.msk [vmem:[#allocation2 + $0x10] sm:$0xff] %vm62_vm0, %v399_v54  ;;  %407 = vst.msk [vmem:[#allocation4 + $0x10] sm:$0xff] %vm62_vm0, %v399_v54 }
 0x1fd   :  { %v442_v55 = vld [vmem:[#allocation2 + $0x8] sm:$0xff] }
 0x1fe   :  { %v441_v4 = vld [vmem:[#allocation2] sm:$0xff] }
 0x1ff   :  { %v1179_v56 = vpack.c.bf16 %v442_v55, %v441_v4 }
 0x201   :  { %1181 = vmatprep.subr.msk.bf16.mxu1 %vm1180_vm1, %v1179_v56  ;;  %v444_v57 = vld [vmem:[#allocation2 + $0x18] sm:$0xff] }
 0x202   :  { %1184 = vmatpush3.bf16.xpose.msk.msra.mxu1 %vm1180_vm1, %v1179_v56  ;;  %v443_v2 = vld [vmem:[#allocation2 + $0x10] sm:$0xff] }
 0x203   :  { %v1185_v58 = vpack.c.bf16 %v444_v57, %v443_v2 }
 0x205   :  { %1187 = vmatprep.subr.msk.bf16.mxu1 %vm1180_vm1, %v1185_v58 }
 0x20a   :  { %1190 = vmatpush3.bf16.xpose.msk.msra.mxu1 %vm1180_vm1, %v1185_v58 }
 0x211   :  { %1108 = vmatmul.mubr.msk.f32.vlgmr.msra.gmra.mrb[0].mxu1 %vm62_vm0, %v426_v59 }
 0x212   :  { %1110 = vmatprep.mubr.msk.f32.mxu1 %vm62_vm0, %v427_v60 }
 0x215   :  { %1111 = vmatmul.mubr.msk.f32.gmra.mrb[2].mxu1 %vm62_vm0, %v428_v61 }
 0x216   :  { %1113 = vmatprep.mubr.msk.f32.mxu1 %vm62_vm0, %v429_v62 }
 0x219   :  { %1114 = vmatmul.mubr.msk.f32.gmra.mrb[4].mxu1 %vm62_vm0, %v430_v63 }
 0x21a   :  { %1116 = vmatprep.mubr.msk.f32.mxu1 %vm62_vm0, %v431_v3 }
 0x21d   :  { %1117 = vmatmul.mubr.msk.f32.gmra.mrb[6].mxu1 %vm62_vm0, %v432_v5 }
 0x21e   :  { %1119 = vmatprep.mubr.msk.f32.mxu1 %vm62_vm0, %v433_v6 }
 0x221   :  { %1120 = vmatmul.mubr.msk.f32.gmra.mrb[8].mxu1 %vm62_vm0, %v434_v7 }
 0x222   :  { %1122 = vmatprep.mubr.msk.f32.mxu1 %vm62_vm0, %v435_v8 }
 0x225   :  { %1123 = vmatmul.mubr.msk.f32.gmra.mrb[10].mxu1 %vm62_vm0, %v436_v9 }
 0x226   :  { %1125 = vmatprep.mubr.msk.f32.mxu1 %vm62_vm0, %v437_v10 }
 0x229   :  { %1126 = vmatmul.mubr.msk.f32.gmra.mrb[12].mxu1 %vm62_vm0, %v438_v11 }
 0x22a   :  { %1128 = vmatprep.mubr.msk.f32.mxu1 %vm62_vm0, %v439_v12 }
 0x22d   :  { %1129 = vmatmul.mubr.msk.f32.gmra.mrb[14].mxu1 %vm62_vm0, %v440_v13 }
 0x22e   :  { %1151 = vmatprep.mubr.bf16.mxu1 %v1219_v14 }
 0x2e4   :  { %v1109_v17 = vpop.f32.mrb[0].mxu1 }
 0x2e5   :  { %v572_v18 = vpop.f32.mrb[1].mxu1 }
 0x2e6   :  { %v683_v19 = vpack.c.bf16 %v1109_v17, %v572_v18 }
 0x2e8   :  { %v1112_v20 = vpop.f32.mrb[2].mxu1  ;;  %1131 = vmatprep.subr.bf16.mxu0 %v683_v19  ;;  %1191 = vmatprep.subr.bf16.mxu1 %v683_v19 }
 0x2e9   :  { %v582_v21 = vpop.f32.mrb[3].mxu1  ;;  %1132 = vmatpush3.bf16.msra.mxu0 %v683_v19  ;;  %1199 = vmatpush3.bf16.msra.mxu1 %v683_v19 }
 0x2ea   :  { %v684_v22 = vpack.c.bf16 %v1112_v20, %v582_v21 }
 0x2ec   :  { %v1115_v23 = vpop.f32.mrb[4].mxu1  ;;  %1133 = vmatprep.subr.bf16.mxu0 %v684_v22  ;;  %1192 = vmatprep.subr.bf16.mxu1 %v684_v22 }
 0x2ed   :  { %v592_v24 = vpop.f32.mrb[5].mxu1  ;;  %1134 = vmatpush3.bf16.msra.mxu0 %v684_v22  ;;  %1200 = vmatpush3.bf16.msra.mxu1 %v684_v22 }
 0x2ee   :  { %v685_v25 = vpack.c.bf16 %v1115_v23, %v592_v24 }
 0x2f0   :  { %v1118_v26 = vpop.f32.mrb[6].mxu1  ;;  %1135 = vmatprep.subr.bf16.mxu0 %v685_v25  ;;  %1193 = vmatprep.subr.bf16.mxu1 %v685_v25 }
 0x2f1   :  { %v602_v27 = vpop.f32.mrb[7].mxu1  ;;  %1136 = vmatpush3.bf16.msra.mxu0 %v685_v25  ;;  %1201 = vmatpush3.bf16.msra.mxu1 %v685_v25 }
 0x2f2   :  { %v686_v28 = vpack.c.bf16 %v1118_v26, %v602_v27 }
 0x2f4   :  { %v1121_v29 = vpop.f32.mrb[8].mxu1  ;;  %1137 = vmatprep.subr.bf16.mxu0 %v686_v28  ;;  %1194 = vmatprep.subr.bf16.mxu1 %v686_v28 }
 0x2f5   :  { %v612_v30 = vpop.f32.mrb[9].mxu1  ;;  %1138 = vmatpush3.bf16.msra.mxu0 %v686_v28  ;;  %1202 = vmatpush3.bf16.msra.mxu1 %v686_v28 }
 0x2f6   :  { %v687_v31 = vpack.c.bf16 %v1121_v29, %v612_v30 }
 0x2f8   :  { %v1124_v32 = vpop.f32.mrb[10].mxu1  ;;  %1139 = vmatprep.subr.bf16.mxu0 %v687_v31  ;;  %1195 = vmatprep.subr.bf16.mxu1 %v687_v31 }
 0x2f9   :  { %v622_v33 = vpop.f32.mrb[11].mxu1  ;;  %1140 = vmatpush3.bf16.msra.mxu0 %v687_v31  ;;  %1203 = vmatpush3.bf16.msra.mxu1 %v687_v31 }
 0x2fa   :  { %v688_v34 = vpack.c.bf16 %v1124_v32, %v622_v33 }
 0x2fc   :  { %v1127_v35 = vpop.f32.mrb[12].mxu1  ;;  %1141 = vmatprep.subr.bf16.mxu0 %v688_v34  ;;  %1196 = vmatprep.subr.bf16.mxu1 %v688_v34 }
 0x2fd   :  { %v632_v36 = vpop.f32.mrb[13].mxu1  ;;  %1142 = vmatpush3.bf16.msra.mxu0 %v688_v34  ;;  %1204 = vmatpush3.bf16.msra.mxu1 %v688_v34 }
 0x2fe   :  { %v689_v37 = vpack.c.bf16 %v1127_v35, %v632_v36 }
 0x300   :  { %v1130_v38 = vpop.f32.mrb[14].mxu1  ;;  %1143 = vmatprep.subr.bf16.mxu0 %v689_v37  ;;  %1197 = vmatprep.subr.bf16.mxu1 %v689_v37 }
 0x301   :  { %v642_v39 = vpop.f32.mrb[15].mxu1  ;;  %1144 = vmatpush3.bf16.msra.mxu0 %v689_v37  ;;  %1205 = vmatpush3.bf16.msra.mxu1 %v689_v37 }
 0x302   :  { %v690_v40 = vpack.c.bf16 %v1130_v38, %v642_v39 }
 0x304   :  { %1145 = vmatprep.subr.bf16.mxu0 %v690_v40  ;;  %1198 = vmatprep.subr.bf16.mxu1 %v690_v40 }
 0x305   :  { %1146 = vmatpush3.bf16.msra.mxu0 %v690_v40  ;;  %1206 = vmatpush3.bf16.msra.mxu1 %v690_v40 }
 0x308   :  { %1152 = vmatmul.mubr.bf16.vlgmr.msra.gmra.mrb[16].mxu1 %v1220_v41  ;;  %1148 = vmatmul.mubr.bf16.vlgmr.msra.gmra.mrb[12].mxu0 %v1225_v42 }
 0x309   :  { %1155 = vmatprep.mubr.bf16.mxu1 %v1221_v43 }
 0x310   :  { %1156 = vmatmul.mubr.bf16.gmra.mrb[20].mxu1 %v1222_v44 }
 0x311   :  { %1159 = vmatprep.mubr.bf16.mxu1 %v1224_v45 }
 0x318   :  { %1160 = vmatmul.mubr.bf16.gmra.mrb[24].mxu1 %v1226_v46 }
 0x319   :  { %1278 = shalt.err (!%p1275_p4)
}
 0x31a   :  { %s1279_s19 = scalar_lea.hbm %s1713_s8, 512 }
 0x31b   :  { %p1280_p5 = scmp.ne.s32.totalorder %s1713_s8, %s1279_s19  ;;  %p1283_p6 = scmp.lt.u32.totalorder %s1279_s19, %s1713_s8 }
 0x31d   :  { %p1285_p7 = pnand %p1283_p6, %p1280_p5 }
 0x31f   :  { %1288 = shalt.err (!%p1285_p7)
}
 0x320   :  { %s1293_s22 = smov 128   ;;  %s1294_s23 = smov 8   ;;  %v673_v47 = vld [vmem:[#allocation3 + $0x30] sm:$0xff]  ;;  %v671_v49 = vld [vmem:[#allocation3 + $0x20] sm:$0xff]  ;;  %v674_v52 = vld [vmem:[#allocation3 + $0x38] sm:$0xff] }
 0x321   :  { %939 = dma.vmem_to_hbm [thread:$0]  %s934_s17, 512, %s1713_s8, [#allocation5], %s1293_s22, %s1293_s22, %s1294_s23   ;;  %v669_v48 = vld [vmem:[#allocation3 + $0x10] sm:$0xff]  ;;  %v667_v50 = vld [vmem:[#allocation3] sm:$0xff]  ;;  %v670_v53 = vld [vmem:[#allocation3 + $0x18] sm:$0xff] }
 0x322   :  { %v672_v55 = vld [vmem:[#allocation3 + $0x28] sm:$0xff]  ;;  %v677_v7 = vld [vmem:[#allocation3 + $0x50] sm:$0xff]  ;;  %v675_v8 = vld [vmem:[#allocation3 + $0x40] sm:$0xff] }
 0x323   :  { %v668_v57 = vld [vmem:[#allocation3 + $0x8] sm:$0xff]  ;;  %v1615_v9 = vld [vmem:[%s1709_s4] ss:$0 sm:$0xff]  ;;  %v678_v11 = vld [vmem:[#allocation3 + $0x58] sm:$0xff] }
 0x324   :  { %v676_v14 = vld [vmem:[#allocation3 + $0x48] sm:$0xff]  ;;  %v681_v35 = vld [vmem:[#allocation3 + $0x70] sm:$0xff]  ;;  %v679_v37 = vld [vmem:[#allocation3 + $0x60] sm:$0xff] }
 0x325   :  { %v682_v39 = vld [vmem:[#allocation3 + $0x78] sm:$0xff]  ;;  %v680_v42 = vld [vmem:[#allocation3 + $0x68] sm:$0xff] }
 0x3db   :  { %v1153_v51 = vpop.f32.mrb[16].mxu1  ;;  %v1149_v1 = vpop.f32.mrb[12].mxu0 }
 0x3dc   :  { %v842_v0 = vadd.f32 %v1153_v51, %v673_v47  ;;  %v789_v54 = vpop.f32.mrb[17].mxu1  ;;  %v838_v4 = vadd.f32 %v1149_v1, %v669_v48  ;;  %v773_v56 = vpop.f32.mrb[13].mxu0 }
 0x3dd   :  { %v840_v2 = vadd.f32 %v789_v54, %v671_v49  ;;  %v1154_v58 = vpop.f32.mrb[18].mxu1  ;;  %v836_v59 = vadd.f32 %v773_v56, %v667_v50  ;;  %v1150_v60 = vpop.f32.mrb[14].mxu0 }
 0x3de   :  { %858 = vst.msk [vmem:[#allocation3 + $0x30] sm:$0xff] %vm62_vm0, %v842_v0  ;;  %v843_v61 = vadd.f32 %v1154_v58, %v674_v52  ;;  %v792_v62 = vpop.f32.mrb[19].mxu1  ;;  %854 = vst.msk [vmem:[#allocation3 + $0x10] sm:$0xff] %vm62_vm0, %v838_v4  ;;  %v839_v63 = vadd.f32 %v1150_v60, %v670_v53  ;;  %v776_v3 = vpop.f32.mrb[15].mxu0 }
 0x3df   :  { %856 = vst.msk [vmem:[#allocation3 + $0x20] sm:$0xff] %vm62_vm0, %v840_v2  ;;  %v841_v5 = vadd.f32 %v792_v62, %v672_v55  ;;  %852 = vst.msk [vmem:[#allocation3] sm:$0xff] %vm62_vm0, %v836_v59  ;;  %v837_v6 = vadd.f32 %v776_v3, %v668_v57 }
 0x3e0   :  { %859 = vst.msk [vmem:[#allocation3 + $0x38] sm:$0xff] %vm62_vm0, %v843_v61  ;;  %855 = vst.msk [vmem:[#allocation3 + $0x18] sm:$0xff] %vm62_vm0, %v839_v63 }
 0x3e1   :  { %857 = vst.msk [vmem:[#allocation3 + $0x28] sm:$0xff] %vm62_vm0, %v841_v5  ;;  %853 = vst.msk [vmem:[#allocation3 + $0x8] sm:$0xff] %vm62_vm0, %v837_v6 }
 0x3e3   :  { %v1157_v10 = vpop.f32.mrb[20].mxu1 }
 0x3e4   :  { %v846_v12 = vadd.f32 %v1157_v10, %v677_v7  ;;  %v805_v13 = vpop.f32.mrb[21].mxu1 }
 0x3e5   :  { %v877_v15 = vld [vmem:[#allocation3 + $0x30] sm:$0xff]  ;;  %v844_v16 = vadd.f32 %v805_v13, %v675_v8  ;;  %v1158_v17 = vpop.f32.mrb[22].mxu1 }
 0x3e6   :  { %v873_v18 = vld [vmem:[#allocation3 + $0x10] sm:$0xff]  ;;  %v900_v19 = vadd.f32 %v1615_v9, %v877_v15  ;;  %v875_v20 = vld [vmem:[#allocation3 + $0x20] sm:$0xff]  ;;  %862 = vst.msk [vmem:[#allocation3 + $0x50] sm:$0xff] %vm62_vm0, %v846_v12  ;;  %v847_v21 = vadd.f32 %v1158_v17, %v678_v11  ;;  %v808_v22 = vpop.f32.mrb[23].mxu1 }
 0x3e7   :  { %v896_v23 = vadd.f32 %v1615_v9, %v873_v18  ;;  %v871_v24 = vld [vmem:[#allocation3] sm:$0xff]  ;;  %v898_v25 = vadd.f32 %v1615_v9, %v875_v20  ;;  %v878_v26 = vld [vmem:[#allocation3 + $0x38] sm:$0xff]  ;;  %860 = vst.msk [vmem:[#allocation3 + $0x40] sm:$0xff] %vm62_vm0, %v844_v16  ;;  %v845_v27 = vadd.f32 %v808_v22, %v676_v14 }
 0x3e8   :  { %v894_v28 = vadd.f32 %v1615_v9, %v871_v24  ;;  %v874_v29 = vld [vmem:[#allocation3 + $0x18] sm:$0xff]  ;;  %916 = vst.msk [vmem:[%s1712_s7 + $0x30] sm:$0xff] %vm62_vm0, %v900_v19  ;;  %v901_v30 = vadd.f32 %v1615_v9, %v878_v26  ;;  %v876_v31 = vld [vmem:[#allocation3 + $0x28] sm:$0xff]  ;;  %863 = vst.msk [vmem:[#allocation3 + $0x58] sm:$0xff] %vm62_vm0, %v847_v21 }
 0x3e9   :  { %912 = vst.msk [vmem:[%s1712_s7 + $0x10] sm:$0xff] %vm62_vm0, %v896_v23  ;;  %v897_v32 = vadd.f32 %v1615_v9, %v874_v29  ;;  %v872_v33 = vld [vmem:[#allocation3 + $0x8] sm:$0xff]  ;;  %914 = vst.msk [vmem:[%s1712_s7 + $0x20] sm:$0xff] %vm62_vm0, %v898_v25  ;;  %v899_v34 = vadd.f32 %v1615_v9, %v876_v31 }
 0x3ea   :  { %861 = vst.msk [vmem:[#allocation3 + $0x48] sm:$0xff] %vm62_vm0, %v845_v27  ;;  %910 = vst.msk [vmem:[%s1712_s7] sm:$0xff] %vm62_vm0, %v894_v28  ;;  %v895_v36 = vadd.f32 %v1615_v9, %v872_v33 }
 0x3eb   :  { %917 = vst.msk [vmem:[%s1712_s7 + $0x38] sm:$0xff] %vm62_vm0, %v901_v30  ;;  %913 = vst.msk [vmem:[%s1712_s7 + $0x18] sm:$0xff] %vm62_vm0, %v897_v32  ;;  %v1161_v38 = vpop.f32.mrb[24].mxu1 }
 0x3ec   :  { %915 = vst.msk [vmem:[%s1712_s7 + $0x28] sm:$0xff] %vm62_vm0, %v899_v34  ;;  %911 = vst.msk [vmem:[%s1712_s7 + $0x8] sm:$0xff] %vm62_vm0, %v895_v36  ;;  %v850_v40 = vadd.f32 %v1161_v38, %v681_v35  ;;  %v821_v41 = vpop.f32.mrb[25].mxu1 }
 0x3ed   :  { %v881_v43 = vld [vmem:[#allocation3 + $0x50] sm:$0xff]  ;;  %v848_v44 = vadd.f32 %v821_v41, %v679_v37  ;;  %v1162_v45 = vpop.f32.mrb[26].mxu1 }
 0x3ee   :  { %v904_v46 = vadd.f32 %v1615_v9, %v881_v43  ;;  %v879_v47 = vld [vmem:[#allocation3 + $0x40] sm:$0xff]  ;;  %866 = vst.msk [vmem:[#allocation3 + $0x70] sm:$0xff] %vm62_vm0, %v850_v40  ;;  %v851_v48 = vadd.f32 %v1162_v45, %v682_v39  ;;  %v824_v49 = vpop.f32.mrb[27].mxu1 }
 0x3ef   :  { %v902_v50 = vadd.f32 %v1615_v9, %v879_v47  ;;  %v882_v51 = vld [vmem:[#allocation3 + $0x58] sm:$0xff]  ;;  %864 = vst.msk [vmem:[#allocation3 + $0x60] sm:$0xff] %vm62_vm0, %v848_v44  ;;  %v849_v52 = vadd.f32 %v824_v49, %v680_v42 }
 0x3f0   :  { %920 = vst.msk [vmem:[%s1712_s7 + $0x50] sm:$0xff] %vm62_vm0, %v904_v46  ;;  %v905_v1 = vadd.f32 %v1615_v9, %v882_v51  ;;  %867 = vst.msk [vmem:[#allocation3 + $0x78] sm:$0xff] %vm62_vm0, %v851_v48 }
 0x3f1   :  { %v880_v53 = vld [vmem:[#allocation3 + $0x48] sm:$0xff]  ;;  %918 = vst.msk [vmem:[%s1712_s7 + $0x40] sm:$0xff] %vm62_vm0, %v902_v50  ;;  %865 = vst.msk [vmem:[#allocation3 + $0x68] sm:$0xff] %vm62_vm0, %v849_v52 }
 0x3f2   :  { %v903_v0 = vadd.f32 %v1615_v9, %v880_v53  ;;  %921 = vst.msk [vmem:[%s1712_s7 + $0x58] sm:$0xff] %vm62_vm0, %v905_v1 }
 0x3f4   :  { %919 = vst.msk [vmem:[%s1712_s7 + $0x48] sm:$0xff] %vm62_vm0, %v903_v0 }
 0x3f5   :  { %v885_v54 = vld [vmem:[#allocation3 + $0x70] sm:$0xff] }
 0x3f6   :  { %v908_v55 = vadd.f32 %v1615_v9, %v885_v54  ;;  %v883_v4 = vld [vmem:[#allocation3 + $0x60] sm:$0xff] }
 0x3f7   :  { %v906_v56 = vadd.f32 %v1615_v9, %v883_v4  ;;  %v886_v57 = vld [vmem:[#allocation3 + $0x78] sm:$0xff] }
 0x3f8   :  { %924 = vst.msk [vmem:[%s1712_s7 + $0x70] sm:$0xff] %vm62_vm0, %v908_v55  ;;  %v909_v2 = vadd.f32 %v1615_v9, %v886_v57  ;;  %v884_v58 = vld [vmem:[#allocation3 + $0x68] sm:$0xff] }
 0x3f9   :  { %922 = vst.msk [vmem:[%s1712_s7 + $0x60] sm:$0xff] %vm62_vm0, %v906_v56  ;;  %v907_v59 = vadd.f32 %v1615_v9, %v884_v58 }
 0x3fa   :  { %925 = vst.msk [vmem:[%s1712_s7 + $0x78] sm:$0xff] %vm62_vm0, %v909_v2 }
 0x3fb   :  { %923 = vst.msk [vmem:[%s1712_s7 + $0x68] sm:$0xff] %vm62_vm0, %v907_v59 }
 0x3fc   :  { %1289 = dma.done.wait [#allocation5], 512  }
 0x3fd   :  { %1290 = vsyncadd [#allocation5], 4294966784 }
 0x3fe   :  { %945 = vsyncpa [#allocation5], 1 }

</bundles_post_ra>
